<compile_context>
chip_gen: v7x
topology: tpu7x:2x2x1
jax: 0.10.0
libtpu: 0.0.40
codegen_flags: <defaults>
</compile_context>

<pallas_src>
import functools

import jax
import jax.numpy as jnp
from jax import lax
from jax.experimental import pallas as pl
from jax.experimental.pallas import tpu as pltpu


def _mean_pooling_kernel(x_ref, m_ref, d_ref, o_ref, *, seq_len, seq_tile):
    # x_ref: (TB, TS, TH) tile of last_hidden_state (native dtype)
    # m_ref: (TB, 1, TS)  tile of the attention mask (lane-dense, f32)
    # d_ref: (TB, 1, 1)   clamped mask counts (precomputed in the wrapper, f32)
    # o_ref: (TB, 1, TH)  f32 output block == accumulator, resident across seq
    s = pl.program_id(2)

    @pl.when(s == 0)
    def _():
        o_ref[...] = jnp.zeros_like(o_ref)

    x = x_ref[...].astype(jnp.float32)   # (TB, TS, TH)
    m = m_ref[...]                       # (TB, 1, TS), already f32

    if seq_len % seq_tile != 0:
        # Ragged final seq tile: rows beyond `rem` are out-of-bounds garbage
        # (possibly NaN/Inf) in BOTH operands -> select them to zero on both
        # sides (do not rely on mask*garbage == 0).
        rem = seq_len - s * seq_tile
        x = jnp.where(lax.broadcasted_iota(jnp.int32, x.shape, 1) < rem, x, 0.0)
        m = jnp.where(lax.broadcasted_iota(jnp.int32, m.shape, 2) < rem, m, 0.0)

    # Masked sum over the seq axis on the MXU:
    #   einsum('bks,bsh->bkh', m, x): (TB,1,TS) @ (TB,TS,TH) -> (TB,1,TH)
    o_ref[...] += lax.dot_general(
        m, x,
        dimension_numbers=(((2,), (1,)), ((0,), (0,))),
        preferred_element_type=jnp.float32)

    @pl.when(s == pl.num_programs(2) - 1)
    def _():
        o_ref[...] = o_ref[...] / d_ref[...]   # denom already clamped to 1e-9


def _round_down(x, m):
    return (x // m) * m


def mean_pooling(last_hidden_state, attention_mask, *, seq_tile=None):
    """Masked mean pooling over the sequence axis (matches the PyTorch module).

    last_hidden_state: (B, S, H)   any float dtype (bf16 recommended at scale)
    attention_mask:    (B, S)      any numeric/bool dtype
    returns:           (B, H) float32
    """
    B, S, H = last_hidden_state.shape
    assert attention_mask.shape == (B, S)

    x_item = jnp.dtype(last_hidden_state.dtype).itemsize

    # ---- generation-aware VMEM budget (v7x: 64 MiB/TC, v5e/v6e: 128 MiB) ----
    try:
        vmem_cap = pltpu.get_tpu_info().vmem_capacity_bytes
    except Exception:  # unknown / emulated target: assume the small (v7x) VMEM
        vmem_cap = 64 * 1024 * 1024
    if vmem_cap >= 96 * 1024 * 1024:              # v5e / v6e (128 MiB physical)
        input_window_bytes = 24 * 1024 * 1024     # double-buffered x + mask windows
        vmem_limit = 72 * 1024 * 1024
    else:                                         # v7x (or unknown)
        input_window_bytes = 12 * 1024 * 1024
        vmem_limit = 44 * 1024 * 1024

    # ---- batch tile (3rd-from-minor dim everywhere -> no (8,128) constraint) ----
    TB = B if B <= 8 else 8
    b_tiles = pl.cdiv(B, TB)

    # ---- hidden tile: lane dim, so a multiple of 128 or the full H ----
    if H % 128 == 0:
        # Keep a double-buffered x tile with >=128 seq rows inside the budget.
        th_cap = input_window_bytes // (2 * TB * 128 * x_item)
        TH = min(H, max(128, _round_down(th_cap, 128)))
        # v7x has 2 TensorCores: if the batch gives a single tile, split H so
        # the "parallel" grid axes have >=2 blocks (harmless on v5e/v6e).
        if b_tiles == 1 and TH == H and H >= 256 and (H // 2) % 128 == 0:
            TH = H // 2
    else:
        TH = H                                    # full (possibly unaligned) H
    h_tiles = pl.cdiv(H, TH)

    # ---- seq tile: sublane dim of x, lane dim of the mask ----
    # Bytes per seq position for ONE buffered copy of (x tile + mask tile);
    # the (TB,1,TS) mask block is sublane-padded 1->8 and kept in f32.
    per_row = TB * (TH * x_item + 8 * 4)
    if seq_tile is not None:
        TS = seq_tile
    else:
        ts_cap = input_window_bytes // (2 * per_row)   # x & mask are double-buffered
        if S <= ts_cap or S <= 128:
            TS = S                                      # whole sequence per step
        else:
            TS = max(128, _round_down(ts_cap, 128))
    assert TS == S or TS % 128 == 0, "seq tile must be a multiple of 128 or the full S"
    s_tiles = pl.cdiv(S, TS)

    # ---- tiny wrapper-side prep (on the (B,S) mask only, never on x) ----
    mask_f = attention_mask.astype(jnp.float32)
    denom = jnp.maximum(jnp.sum(mask_f, axis=1), 1e-9)   # torch.clamp(min=1e-9)
    denom = denom.reshape(B, 1, 1)
    mask3 = mask_f.reshape(B, 1, S)

    kernel = functools.partial(_mean_pooling_kernel, seq_len=S, seq_tile=TS)

    # Default double buffering only (HBM-bound kernel); spend VMEM on TS, not depth.
    out = pl.pallas_call(
        kernel,
        out_shape=jax.ShapeDtypeStruct((B, 1, H), jnp.float32),
        grid_spec=pltpu.PrefetchScalarGridSpec(
            num_scalar_prefetch=0,
            grid=(b_tiles, h_tiles, s_tiles),
            in_specs=[
                pl.BlockSpec((TB, TS, TH), lambda b, h, s: (b, s, h)),
                pl.BlockSpec((TB, 1, TS), lambda b, h, s: (b, 0, s)),
                pl.BlockSpec((TB, 1, 1), lambda b, h, s: (b, 0, 0)),
            ],
            out_specs=pl.BlockSpec((TB, 1, TH), lambda b, h, s: (b, 0, h)),
        ),
        compiler_params=pltpu.CompilerParams(
            dimension_semantics=("parallel", "parallel", "arbitrary"),
            vmem_limit_bytes=vmem_limit,
        ),
    )(last_hidden_state, mask3, denom)

    return out.reshape(B, H)


def mean_pooling_ref(last_hidden_state, attention_mask):
    """Pure-JAX reference matching the PyTorch forward exactly."""
    mask = attention_mask[..., None].astype(jnp.float32)
    x = last_hidden_state.astype(jnp.float32)
    sum_embeddings = jnp.sum(x * mask, axis=1)
    sum_mask = jnp.maximum(jnp.sum(mask, axis=1), 1e-9)   # torch.clamp(min=1e-9)
    return sum_embeddings / sum_mask


def _check(out, ref, name, atol=5e-4, rtol=5e-4):
    # Tolerance leaves margin for MXU f32 accumulation order vs. the VPU ref.
    assert out.shape == ref.shape, f"{name}: shape {out.shape} vs {ref.shape}"
    assert bool(jnp.allclose(out, ref, atol=atol, rtol=rtol)), f"{name}: mismatch vs reference"


if __name__ == "__main__":
    key = jax.random.PRNGKey(0)
    keys = jax.random.split(key, 8)

    # 1) Small shape consistent with the module: (batch=2, seq=8, hidden=32).
    B, S, H = 2, 8, 32
    x = jax.random.normal(keys[0], (B, S, H), dtype=jnp.float32)
    m = (jax.random.uniform(keys[1], (B, S)) > 0.3).astype(jnp.float32)
    out = jax.block_until_ready(mean_pooling(x, m))
    _check(out, mean_pooling_ref(x, m), "case1")

    # 2) Odd, unaligned dims (single block, full-extent tiles).
    B, S, H = 3, 13, 100
    x = jax.random.normal(keys[2], (B, S, H), dtype=jnp.float32)
    m = (jax.random.uniform(keys[3], (B, S)) > 0.5).astype(jnp.float32)
    out = jax.block_until_ready(mean_pooling(x, m))
    _check(out, mean_pooling_ref(x, m), "case2")

    # 3) Ragged batch tiles (B=10 -> 8+2) and ragged seq tail (300 = 2*128+44).
    B, S, H = 10, 300, 128
    x = jax.random.normal(keys[4], (B, S, H), dtype=jnp.float32)
    m = (jax.random.uniform(keys[5], (B, S)) > 0.4).astype(jnp.float32)
    out = jax.block_until_ready(mean_pooling(x, m, seq_tile=128))
    _check(out, mean_pooling_ref(x, m), "case3")

    # 4) Hidden-dim split (2 parallel H blocks) + seq accumulation, bf16 input.
    B, S, H = 2, 300, 256
    x = jax.random.normal(keys[6], (B, S, H), dtype=jnp.float32).astype(jnp.bfloat16)
    m = (jax.random.uniform(keys[7], (B, S)) > 0.4).astype(jnp.float32)
    out = jax.block_until_ready(mean_pooling(x, m, seq_tile=128))
    _check(out, mean_pooling_ref(x, m), "case4")

    print("KERNEL_OK")
</pallas_src>

<mosaic_0001>
module attributes {stable_mosaic.version = 11 : i64} {
  func.func @_mean_pooling_kernel(%arg0: i32, %arg1: i32, %arg2: i32, %arg3: memref<2x8x32xf32, #tpu.memory_space<vmem>>, %arg4: memref<2x1x8xf32, #tpu.memory_space<vmem>>, %arg5: memref<2x1x1xf32, #tpu.memory_space<vmem>>, %arg6: memref<2x1x32xf32, #tpu.memory_space<vmem>>) attributes {dimension_semantics = [#tpu.dimension_semantics<parallel>, #tpu.dimension_semantics<parallel>, #tpu.dimension_semantics<arbitrary>], iteration_bounds = array<i64: 1, 1, 1>, scalar_prefetch = 0 : i64, scratch_operands = 0 : i64, tpu.core_type = #tpu.core_type<tc>, window_params = [{transform_indices = @transform_0, window_bounds = array<i64: 2, 8, 32>}, {transform_indices = @transform_1, window_bounds = array<i64: 2, 1, 8>}, {transform_indices = @transform_2, window_bounds = array<i64: 2, 1, 1>}, {transform_indices = @transform_3, window_bounds = array<i64: 2, 1, 32>}]} {
    %c0_i32 = arith.constant 0 : i32
    %0 = arith.cmpi eq, %arg2, %c0_i32 : i32
    %1 = arith.extui %0 : i1 to i32
    %c0_i32_0 = arith.constant 0 : i32
    %2 = arith.cmpi ne, %1, %c0_i32_0 : i32
    scf.if %2 {
      %cst_14 = arith.constant 0.000000e+00 : f32
      %12 = vector.broadcast %cst_14 : f32 to vector<2x1x32xf32>
      %c0_15 = arith.constant 0 : index
      %c0_16 = arith.constant 0 : index
      %c0_17 = arith.constant 0 : index
      %13 = vector.load %arg6[%c0_15, %c0_16, %c0_17] : memref<2x1x32xf32, #tpu.memory_space<vmem>>, vector<2x1x32xf32>
      tpu.vector_store %arg6[%c0_15, %c0_16, %c0_17], %12 {strides = array<i32>} : memref<2x1x32xf32, #tpu.memory_space<vmem>>, vector<2x1x32xf32>,
    } else {
    }
    %c0 = arith.constant 0 : index
    %c0_1 = arith.constant 0 : index
    %c0_2 = arith.constant 0 : index
    %3 = vector.load %arg3[%c0, %c0_1, %c0_2] : memref<2x8x32xf32, #tpu.memory_space<vmem>>, vector<2x8x32xf32>
    %c0_3 = arith.constant 0 : index
    %c0_4 = arith.constant 0 : index
    %c0_5 = arith.constant 0 : index
    %4 = vector.load %arg4[%c0_3, %c0_4, %c0_5] : memref<2x1x8xf32, #tpu.memory_space<vmem>>, vector<2x1x8xf32>
    %c0_6 = arith.constant 0 : index
    %c0_7 = arith.constant 0 : index
    %c0_8 = arith.constant 0 : index
    %5 = vector.load %arg6[%c0_6, %c0_7, %c0_8] : memref<2x1x32xf32, #tpu.memory_space<vmem>>, vector<2x1x32xf32>
    %cst = arith.constant dense<0.000000e+00> : vector<2x1x32xf32>
    %6 = tpu.matmul %4, %3, %cst {dimension_numbers = #tpu.dot_dimension_numbers<[2], [1], [1], [2], [0, 0, 0, 1, 1, 2], [0], [0]>} : vector<2x1x8xf32>, vector<2x8x32xf32>, vector<2x1x32xf32> -> vector<2x1x32xf32>
    %7 = arith.addf %5, %6 : vector<2x1x32xf32>
    %c0_9 = arith.constant 0 : index
    %c0_10 = arith.constant 0 : index
    %c0_11 = arith.constant 0 : index
    %8 = vector.load %arg6[%c0_9, %c0_10, %c0_11] : memref<2x1x32xf32, #tpu.memory_space<vmem>>, vector<2x1x32xf32>
    tpu.vector_store %arg6[%c0_9, %c0_10, %c0_11], %7 {strides = array<i32>} : memref<2x1x32xf32, #tpu.memory_space<vmem>>, vector<2x1x32xf32>,
    %c0_i32_12 = arith.constant 0 : i32
    %9 = arith.cmpi eq, %arg2, %c0_i32_12 : i32
    %10 = arith.extui %9 : i1 to i32
    %c0_i32_13 = arith.constant 0 : i32
    %11 = arith.cmpi ne, %10, %c0_i32_13 : i32
    scf.if %11 {
      %c0_14 = arith.constant 0 : index
      %c0_15 = arith.constant 0 : index
      %c0_16 = arith.constant 0 : index
      %12 = vector.load %arg6[%c0_14, %c0_15, %c0_16] : memref<2x1x32xf32, #tpu.memory_space<vmem>>, vector<2x1x32xf32>
      %c0_17 = arith.constant 0 : index
      %c0_18 = arith.constant 0 : index
      %c0_19 = arith.constant 0 : index
      %13 = vector.load %arg5[%c0_17, %c0_18, %c0_19] : memref<2x1x1xf32, #tpu.memory_space<vmem>>, vector<2x1x1xf32>
      %14 = vector.broadcast %13 : vector<2x1x1xf32> to vector<2x1x32xf32>
      %15 = arith.divf %12, %14 : vector<2x1x32xf32>
      %c0_20 = arith.constant 0 : index
      %c0_21 = arith.constant 0 : index
      %c0_22 = arith.constant 0 : index
      %16 = vector.load %arg6[%c0_20, %c0_21, %c0_22] : memref<2x1x32xf32, #tpu.memory_space<vmem>>, vector<2x1x32xf32>
      tpu.vector_store %arg6[%c0_20, %c0_21, %c0_22], %15 {strides = array<i32>} : memref<2x1x32xf32, #tpu.memory_space<vmem>>, vector<2x1x32xf32>,
    } else {
    }
    return
  }
  func.func @transform_0(%arg0: i32, %arg1: i32, %arg2: i32) -> (i32, i32, i32) {
    %c0_i32 = arith.constant 0 : i32
    return %arg0, %arg2, %arg1 : i32, i32, i32
  }
  func.func @transform_1(%arg0: i32, %arg1: i32, %arg2: i32) -> (i32, i32, i32) {
    %c0_i32 = arith.constant 0 : i32
    %c0_i32_0 = arith.constant 0 : i32
    return %arg0, %c0_i32, %arg2 : i32, i32, i32
  }
  func.func @transform_2(%arg0: i32, %arg1: i32, %arg2: i32) -> (i32, i32, i32) {
    %c0_i32 = arith.constant 0 : i32
    %c0_i32_0 = arith.constant 0 : i32
    %c0_i32_1 = arith.constant 0 : i32
    return %arg0, %c0_i32, %c0_i32_0 : i32, i32, i32
  }
  func.func @transform_3(%arg0: i32, %arg1: i32, %arg2: i32) -> (i32, i32, i32) {
    %c0_i32 = arith.constant 0 : i32
    %c0_i32_0 = arith.constant 0 : i32
    return %arg0, %c0_i32, %arg1 : i32, i32, i32
  }
}

</mosaic_0001>

<bundles_post_ra>
// kernel: tpu_custom_call.1
= control target key start
LH: loop header
LB: loop body
LE: loop exit
PB: predicated region body
PF: predicated region fallthrough
CT: control target
= control target key end

     0   :  { %8 = vsyncpa [#allocation3], 0  ;;  %s391_s0 = inlined_call_operand.hbm [shape: f32[2,8,32], index: 0, kind: input, shape index: {}]   ;;  %s392_s1 = inlined_call_operand.vmem [shape: f32[2,1,8], index: 1, kind: input, shape index: {}]   ;;  %s393_s2 = inlined_call_operand.vmem [shape: f32[2,1,1], index: 2, kind: input, shape index: {}]   ;;  %s394_s3 = inlined_call_operand.hbm [shape: f32[2,1,32], index: 3, kind: output, shape index: {}]  }
   0x1   :  { %9 = vsyncpa [#allocation4], 0  ;;  %s320_s12 = smov [#allocation2]   ;;  %s272_s16 = scalar_lea.hbm %s391_s0, 256 }
   0x2   :  { %s15_s13 = sshll.u32 %s320_s12, 4  ;;  %p273_p0 = scmp.ne.s32.totalorder %s391_s0, %s272_s16  ;;  %s16_s13 = int_to_ptr.vmem [resolvable:$true] %s15_s13 }
   0x3   :  { %p276_p1 = scmp.lt.u32.totalorder %s272_s16, %s391_s0 }
   0x5   :  { %p278_p2 = pnand %p276_p1, %p273_p0 }
   0x7   :  { %281 = shalt.err (!%p278_p2)
}
   0x8   :  { %s282_s21 = scalar_lea.vmem %s16_s13, 256  ;;  %p287_p4 = scmp.lt.s32.totalorder %s16_s13, %s16_s13 }
   0x9   :  { %p283_p3 = scmp.ne.s32.totalorder %s16_s13, %s282_s21  ;;  %p288_p5 = scmp.lt.s32.totalorder %s282_s21, %s282_s21 }
   0xb   :  { %p289_p6 = por %p288_p5, %p287_p4 }
   0xd   :  { %p290_p7 = pnand %p289_p6, %p283_p3 }
   0xf   :  { %293 = shalt.err (!%p290_p7)
}
  0x10   :  { %s321_s22 = smov 128   ;;  %s322_s23 = smov 8  }
  0x11   :  { %21 = dma.hbm_to_vmem [thread:$0]  %s391_s0, 256, %s16_s13, [#allocation3], %s321_s22, %s321_s22, %s322_s23  }
  0x12   :  { %316 = dma.done.wait [#allocation3], 256  }
  0x13   :  { %317 = vsyncadd [#allocation3], 4294967040  ;;  %v323_v0 = vmov 0.0   ;;  %vm324_vm0 = vmmov 0   ;;  %v325_v1 = vmov 0   ;;  %vm42_vm1 = vcmask 64512  }
  0x14   :  { %248 = vmatprep.subr.mxu0 %v323_v0  ;;  %253 = vmatprep.subr.mxu1 %v323_v0  ;;  %v36_v2 = vld [vmem:[#allocation2] sm:$0xff]  ;;  %v37_v3 = vld [vmem:[#allocation2 + $0x8] sm:$0xff]  ;;  %vm33_vm2 = vcmask 253952   ;;  %v206_v8 = vlaneseq }
  0x15   :  { %250 = vmatprep.mubr.msk.f32.mxu0 %vm324_vm0, %v323_v0  ;;  %255 = vmatprep.mubr.msk.f32.mxu1 %vm324_vm0, %v323_v0  ;;  %v38_v4 = vld [vmem:[%s392_s1] sm:$0x1]  ;;  %v39_v5 = vld [vmem:[%s392_s1 + $0x1] sm:$0x1]  ;;  %34 = vst.msk [vmem:[#allocation5] sm:$0x1] %vm33_vm2, %v323_v0 }
  0x16   :  { %267 = vset.pattern.permute.xlu0 %v325_v1  ;;  %249 = vmatpush3.msra.mxu0 %v36_v2  ;;  %v199_v6 = vld [vmem:[%s393_s2] sm:$0x1]  ;;  %v200_v7 = vld [vmem:[%s393_s2 + $0x1] sm:$0x1]  ;;  %35 = vst.msk [vmem:[#allocation5 + $0x1] sm:$0x1] %vm33_vm2, %v323_v0 }
  0x17   :  { %254 = vmatpush3.msra.mxu1 %v37_v3  ;;  %251 = vmatmul.mubr.msk.f32.vlgmr.msra.gmra.mrb[0].mxu0 %vm42_vm1, %v38_v4  ;;  %v207_v9 = vshrl.u32 %v206_v8, 7  ;;  %s326_s1 = smov [#allocation5]  }
  0x18   :  { %256 = vmatmul.mubr.msk.f32.vlgmr.msra.gmra.mrb[0].mxu1 %vm42_vm1, %v39_v5  ;;  %203 = vperm.xlu0 %267, %v199_v6   ;;  %s230_s2 = sshll.u32 %s326_s1, 4  ;;  %s231_s2 = int_to_ptr.vmem [resolvable:$true] %s230_s2 }
  0x19   :  { %v208_v11 = vsub.s32 0, %v207_v9  ;;  %s294_s6 = scalar_lea.vmem %s231_s2, 32  ;;  %p299_p9 = scmp.lt.s32.totalorder %s231_s2, %s231_s2 }
  0x1a   :  { %p295_p8 = scmp.ne.s32.totalorder %s231_s2, %s294_s6  ;;  %p300_p10 = scmp.lt.s32.totalorder %s294_s6, %s294_s6 }
  0x1c   :  { %212 = vperm.xlu0 %267, %v200_v7   ;;  %v40_v15 = vld [vmem:[#allocation5] sm:$0x1]  ;;  %p301_p11 = por %p300_p10, %p299_p9 }
  0x1d   :  { %v41_v16 = vld [vmem:[#allocation5 + $0x1] sm:$0x1] }
  0x1e   :  { %p302_p12 = pnand %p301_p11, %p295_p8 }
  0x97   :  { %v204_v10 = vpop.permute.xlu0 %203 }
  0x98   :  { %v209_v13 = vrot.slane %v204_v10, %v208_v11 }
  0x9a   :  { %268 = vrcp.f32 %v209_v13 }
  0x9b   :  { %v213_v12 = vpop.permute.xlu0 %212 }
  0x9c   :  { %v218_v14 = vrot.slane %v213_v12, %v208_v11 }
  0x9e   :  { %270 = vrcp.f32 %v218_v14 }
  0xa4   :  { %v269_v23 = vpop.eup %268 }
  0xa8   :  { %v271_v24 = vpop.eup %270 }
  0xea   :  { %v112_v17 = vpop.f32.mrb[0].mxu0 }
  0xeb   :  { %v185_v18 = vpop.f32.mrb[0].mxu1  ;;  %v189_v19 = vadd.f32 %v112_v17, %v40_v15  ;;  %v252_v21 = vpop.f32.mrb[1].mxu0 }
  0xec   :  { %v190_v20 = vadd.f32 %v185_v18, %v41_v16  ;;  %v257_v22 = vpop.f32.mrb[1].mxu1 }
  0xed   :  { %192 = vst.msk [vmem:[#allocation5] sm:$0x1] %vm33_vm2, %v189_v19 }
  0xee   :  { %193 = vst.msk [vmem:[#allocation5 + $0x1] sm:$0x1] %vm33_vm2, %v190_v20 }
  0xf4   :  { %v197_v25 = vld [vmem:[#allocation5] sm:$0x1] }
  0xf5   :  { %v198_v26 = vld [vmem:[#allocation5 + $0x1] sm:$0x1]  ;;  %v220_v27 = vmul.f32 %v269_v23, %v197_v25 }
  0xf6   :  { %v222_v28 = vmul.f32 %v271_v24, %v198_v26 }
  0xf7   :  { %223 = vst.msk [vmem:[#allocation5] sm:$0x1] %vm33_vm2, %v220_v27 }
  0xf8   :  { %224 = vst.msk [vmem:[#allocation5 + $0x1] sm:$0x1] %vm33_vm2, %v222_v28 }
  0xf9   :  { %305 = shalt.err (!%p302_p12)
}
  0xfa   :  { %s306_s9 = scalar_lea.hbm %s394_s3, 32 }
  0xfb   :  { %p307_p13 = scmp.ne.s32.totalorder %s394_s3, %s306_s9  ;;  %p310_p0 = scmp.lt.u32.totalorder %s306_s9, %s394_s3 }
  0xfd   :  { %p312_p1 = pnand %p310_p0, %p307_p13 }
  0xff   :  { %315 = shalt.err (!%p312_p1)
}
 0x100   :  { %s327_s14 = smov 16   ;;  %s328_s15 = smov 1  }
 0x101   :  { %236 = dma.vmem_to_hbm [thread:$0]  %s231_s2, 32, %s394_s3, [#allocation4], %s327_s14, %s327_s14, %s328_s15  }
 0x102   :  { %318 = dma.done.wait [#allocation4], 32  }
 0x103   :  { %319 = vsyncadd [#allocation4], 4294967264 }
 0x104   :  { %240 = vsyncpa [#allocation3], 1 }
 0x105   :  { %241 = vsyncpa [#allocation4], 1 }

</bundles_post_ra>
